<compile_context>
chip_gen: v7x
topology: tpu7x:2x2x1
jax: 0.10.0
libtpu: 0.0.40
codegen_flags: <defaults>
</compile_context>

<pallas_src>
import functools

import jax
import jax.numpy as jnp
from jax import lax
from jax.experimental import pallas as pl
from jax.experimental.pallas import tpu as pltpu


def _stats_kernel(pr_ref, gt_ref, bce_ref, inter_ref, psum_ref, ysum_ref,
                  *, tiles_per_chunk, tile_pixels, hw, needs_mask):
    t = pl.program_id(2)

    @pl.when(t == 0)
    def _init():
        bce_ref[...] = jnp.zeros_like(bce_ref)
        inter_ref[...] = jnp.zeros_like(inter_ref)
        psum_ref[...] = jnp.zeros_like(psum_ref)
        ysum_ref[...] = jnp.zeros_like(ysum_ref)

    x = pr_ref[...].astype(jnp.float32)   # (R, tp) logits
    y = gt_ref[...].astype(jnp.float32)   # (R, tp) targets in {0, 1}

    # Shared transcendental: exp(-|x|) feeds both BCE and the first sigmoid.
    e = jnp.exp(-jnp.abs(x))                         # in (0, 1]
    # BCE with logits (same stable form torch.nn.BCEWithLogitsLoss uses).
    bce = jnp.maximum(x, 0.0) - x * y + jnp.log1p(e)
    # First sigmoid (module) via the shared exp; second sigmoid is smp's
    # from_logits=True applied to the already-sigmoided value (intentional).
    inv1pe = 1.0 / (1.0 + e)
    s1 = jnp.where(x >= 0.0, inv1pe, e * inv1pe)     # sigmoid(x), stable
    p = jax.nn.sigmoid(s1)                           # sigmoid(sigmoid(x))
    py = p * y

    if needs_mask:
        # Ragged tail / duplicated clamped tile: zero out-of-range pixels.
        chunk = pl.program_id(1)
        base = (chunk * tiles_per_chunk + t) * tile_pixels
        lane = lax.broadcasted_iota(jnp.int32, x.shape, 1)
        valid = (base + lane) < hw
        bce = jnp.where(valid, bce, 0.0)
        py = jnp.where(valid, py, 0.0)
        p = jnp.where(valid, p, 0.0)
        y = jnp.where(valid, y, 0.0)

    bce_ref[...] += jnp.sum(bce, axis=-1, keepdims=True)   # (R, 1)
    inter_ref[...] += jnp.sum(py, axis=-1, keepdims=True)
    psum_ref[...] += jnp.sum(p, axis=-1, keepdims=True)
    ysum_ref[...] += jnp.sum(y, axis=-1, keepdims=True)


def multi_bce_tversky_loss(y_pr, y_gt, raito=0.5, mode='multilabel'):
    """y_pr, y_gt: (N, C, H, W) — PyTorch NCHW layout. Returns scalar loss."""
    assert mode == 'multilabel'
    # TODO(synk): 'multiclass' branch (argmax over channels + multiclass
    # Tversky) not implemented; the module default is 'multilabel'.
    assert 0.0 <= raito <= 1.0, 'loss raito invalid.'

    N, C, H, W = y_pr.shape
    HW = H * W
    M = N * C

    # Free reshapes only: rows = flattened (n, c) pairs, pixels on lanes.
    pr = y_pr.reshape(M, HW)
    gt = y_gt.reshape(M, HW)

    # Rows per block: 8 fills the f32 sublanes; fall back to full M if smaller.
    R = M if M < 8 else 8
    NR = pl.cdiv(M, R)

    # Pixel tile: lane-aligned, sized so the pipelined footprint
    # (2 inputs x 2 pipeline buffers x R x tp x itemsize) stays ~8 MiB.
    itembytes = pr.dtype.itemsize + gt.dtype.itemsize
    budget = 8 * 1024 * 1024
    tp_budget = max(128, (budget // (2 * R * itembytes)) // 128 * 128)
    tp = HW if HW <= tp_budget else tp_budget
    T_total = pl.cdiv(HW, tp)

    # Split the tile range into 2 'parallel' chunks so v7x's two TensorCores
    # each get an independent slice; no effect on single-core v5e/v6e.
    NCH = 2 if T_total >= 2 else 1
    T_per = pl.cdiv(T_total, NCH)
    needs_mask = (tp * T_total != HW) or (NCH * T_per != T_total)

    if NCH * T_per == T_total:
        in_idx = lambda r, c, t: (r, c * T_per + t)
    else:
        # Ragged chunk split: clamp the block index; the kernel masks the
        # duplicated (fully out-of-range) tile so it contributes zero.
        last = T_total - 1
        in_idx = lambda r, c, t: (r, jnp.minimum(c * T_per + t, last))

    kernel = functools.partial(
        _stats_kernel, tiles_per_chunk=T_per, tile_pixels=tp, hw=HW,
        needs_mask=needs_mask)

    stat = jax.ShapeDtypeStruct((NCH, M, 1), jnp.float32)
    out_spec = pl.BlockSpec((None, R, 1), lambda r, c, t: (c, r, 0))

    bce_p, inter_p, psum_p, ysum_p = pl.pallas_call(
        kernel,
        out_shape=(stat, stat, stat, stat),
        grid=(NR, NCH, T_per),
        in_specs=[pl.BlockSpec((R, tp), in_idx),
                  pl.BlockSpec((R, tp), in_idx)],
        out_specs=(out_spec, out_spec, out_spec, out_spec),
        compiler_params=pltpu.CompilerParams(
            dimension_semantics=("parallel", "parallel", "arbitrary"),
            vmem_limit_bytes=32 * 1024 * 1024),
    )(pr, gt)

    # Tiny finalize in plain JAX: combine per-(chunk, n, c) partial stats.
    inter = jnp.sum(inter_p.reshape(NCH, N, C), axis=(0, 1))   # (C,)
    psum = jnp.sum(psum_p.reshape(NCH, N, C), axis=(0, 1))
    ysum = jnp.sum(ysum_p.reshape(NCH, N, C), axis=(0, 1))
    fp = psum - inter          # sum p*(1-y) = sum p - sum p*y
    fn = ysum - inter          # sum (1-p)*y = sum y - sum p*y
    eps = 1e-7
    score = inter / jnp.maximum(inter + 0.5 * fp + 0.5 * fn + eps, eps)
    loss_c = (1.0 - score) * (ysum > 0.0).astype(jnp.float32)
    tversky = jnp.sum(loss_c) / C                   # mean over classes
    bce_mean = jnp.sum(bce_p) / (M * HW)            # mean over all elements
    return raito * bce_mean + (1.0 - raito) * tversky


def _reference_loss(y_pr, y_gt, raito=0.5):
    """Pure-JAX reference mirroring the PyTorch module exactly."""
    x = y_pr.astype(jnp.float32)
    y = y_gt.astype(jnp.float32)
    bce = jnp.mean(jnp.maximum(x, 0.0) - x * y + jnp.log1p(jnp.exp(-jnp.abs(x))))
    N, C, H, W = x.shape
    p = jax.nn.sigmoid(jax.nn.sigmoid(x))           # double sigmoid (see top)
    pt = jnp.transpose(p, (1, 0, 2, 3)).reshape(C, -1)
    yt = jnp.transpose(y, (1, 0, 2, 3)).reshape(C, -1)
    inter = jnp.sum(pt * yt, axis=-1)
    fp = jnp.sum(pt * (1.0 - yt), axis=-1)
    fn = jnp.sum((1.0 - pt) * yt, axis=-1)
    eps = 1e-7
    score = inter / jnp.maximum(inter + 0.5 * fp + 0.5 * fn + eps, eps)
    loss_c = (1.0 - score) * (jnp.sum(yt, axis=-1) > 0).astype(jnp.float32)
    return raito * bce + (1.0 - raito) * jnp.mean(loss_c)


if __name__ == "__main__":
    key = jax.random.PRNGKey(0)
    k1, k2 = jax.random.split(key)
    N, C, H, W = 2, 4, 16, 16
    y_pr = jax.random.normal(k1, (N, C, H, W), dtype=jnp.float32)
    y_gt = jax.random.bernoulli(k2, 0.3, (N, C, H, W)).astype(jnp.float32)

    loss = multi_bce_tversky_loss(y_pr, y_gt, raito=0.5, mode='multilabel')
    loss = jax.block_until_ready(loss)

    ref = jax.block_until_ready(_reference_loss(y_pr, y_gt, raito=0.5))
    assert jnp.allclose(loss, ref, atol=2e-5, rtol=1e-5), (loss, ref)
    print("KERNEL_OK")
</pallas_src>

<mosaic_0001>
module attributes {stable_mosaic.version = 11 : i64} {
  func.func @_stats_kernel(%arg0: i32, %arg1: i32, %arg2: i32, %arg3: memref<8x256xf32, #tpu.memory_space<vmem>>, %arg4: memref<8x256xf32, #tpu.memory_space<vmem>>, %arg5: memref<1x8x1xf32, #tpu.memory_space<vmem>>, %arg6: memref<1x8x1xf32, #tpu.memory_space<vmem>>, %arg7: memref<1x8x1xf32, #tpu.memory_space<vmem>>, %arg8: memref<1x8x1xf32, #tpu.memory_space<vmem>>) attributes {dimension_semantics = [#tpu.dimension_semantics<parallel>, #tpu.dimension_semantics<parallel>, #tpu.dimension_semantics<arbitrary>], iteration_bounds = array<i64: 1, 1, 1>, scalar_prefetch = 0 : i64, scratch_operands = 0 : i64, tpu.core_type = #tpu.core_type<tc>, window_params = [{transform_indices = @transform_0, window_bounds = array<i64: 8, 256>}, {transform_indices = @transform_1, window_bounds = array<i64: 8, 256>}, {transform_indices = @transform_2, window_bounds = array<i64: 1, 8, 1>}, {transform_indices = @transform_3, window_bounds = array<i64: 1, 8, 1>}, {transform_indices = @transform_4, window_bounds = array<i64: 1, 8, 1>}, {transform_indices = @transform_5, window_bounds = array<i64: 1, 8, 1>}]} {
    %c0_i32 = arith.constant 0 : i32
    %0 = arith.cmpi eq, %arg2, %c0_i32 : i32
    %1 = arith.extui %0 : i1 to i32
    %c0_i32_0 = arith.constant 0 : i32
    %2 = arith.cmpi ne, %1, %c0_i32_0 : i32
    scf.if %2 {
      %cst_37 = arith.constant 0.000000e+00 : f32
      %61 = vector.broadcast %cst_37 : f32 to vector<8x1xf32>
      %c0_38 = arith.constant 0 : index
      %c0_39 = arith.constant 0 : index
      %c0_40 = arith.constant 0 : index
      %62 = vector.load %arg5[%c0_38, %c0_39, %c0_40] : memref<1x8x1xf32, #tpu.memory_space<vmem>>, vector<1x8x1xf32>
      %63 = vector.shape_cast %62 : vector<1x8x1xf32> to vector<8x1xf32>
      %64 = vector.shape_cast %61 : vector<8x1xf32> to vector<1x8x1xf32>
      tpu.vector_store %arg5[%c0_38, %c0_39, %c0_40], %64 {strides = array<i32>} : memref<1x8x1xf32, #tpu.memory_space<vmem>>, vector<1x8x1xf32>,
      %cst_41 = arith.constant 0.000000e+00 : f32
      %65 = vector.broadcast %cst_41 : f32 to vector<8x1xf32>
      %c0_42 = arith.constant 0 : index
      %c0_43 = arith.constant 0 : index
      %c0_44 = arith.constant 0 : index
      %66 = vector.load %arg6[%c0_42, %c0_43, %c0_44] : memref<1x8x1xf32, #tpu.memory_space<vmem>>, vector<1x8x1xf32>
      %67 = vector.shape_cast %66 : vector<1x8x1xf32> to vector<8x1xf32>
      %68 = vector.shape_cast %65 : vector<8x1xf32> to vector<1x8x1xf32>
      tpu.vector_store %arg6[%c0_42, %c0_43, %c0_44], %68 {strides = array<i32>} : memref<1x8x1xf32, #tpu.memory_space<vmem>>, vector<1x8x1xf32>,
      %cst_45 = arith.constant 0.000000e+00 : f32
      %69 = vector.broadcast %cst_45 : f32 to vector<8x1xf32>
      %c0_46 = arith.constant 0 : index
      %c0_47 = arith.constant 0 : index
      %c0_48 = arith.constant 0 : index
      %70 = vector.load %arg7[%c0_46, %c0_47, %c0_48] : memref<1x8x1xf32, #tpu.memory_space<vmem>>, vector<1x8x1xf32>
      %71 = vector.shape_cast %70 : vector<1x8x1xf32> to vector<8x1xf32>
      %72 = vector.shape_cast %69 : vector<8x1xf32> to vector<1x8x1xf32>
      tpu.vector_store %arg7[%c0_46, %c0_47, %c0_48], %72 {strides = array<i32>} : memref<1x8x1xf32, #tpu.memory_space<vmem>>, vector<1x8x1xf32>,
      %cst_49 = arith.constant 0.000000e+00 : f32
      %73 = vector.broadcast %cst_49 : f32 to vector<8x1xf32>
      %c0_50 = arith.constant 0 : index
      %c0_51 = arith.constant 0 : index
      %c0_52 = arith.constant 0 : index
      %74 = vector.load %arg8[%c0_50, %c0_51, %c0_52] : memref<1x8x1xf32, #tpu.memory_space<vmem>>, vector<1x8x1xf32>
      %75 = vector.shape_cast %74 : vector<1x8x1xf32> to vector<8x1xf32>
      %76 = vector.shape_cast %73 : vector<8x1xf32> to vector<1x8x1xf32>
      tpu.vector_store %arg8[%c0_50, %c0_51, %c0_52], %76 {strides = array<i32>} : memref<1x8x1xf32, #tpu.memory_space<vmem>>, vector<1x8x1xf32>,
    } else {
    }
    %c0 = arith.constant 0 : index
    %c0_1 = arith.constant 0 : index
    %3 = vector.load %arg3[%c0, %c0_1] : memref<8x256xf32, #tpu.memory_space<vmem>>, vector<8x256xf32>
    %c0_2 = arith.constant 0 : index
    %c0_3 = arith.constant 0 : index
    %4 = vector.load %arg4[%c0_2, %c0_3] : memref<8x256xf32, #tpu.memory_space<vmem>>, vector<8x256xf32>
    %5 = math.absf %3 : vector<8x256xf32>
    %cst = arith.constant 0.000000e+00 : f32
    %6 = vector.broadcast %cst : f32 to vector<8x256xf32>
    %7 = arith.subf %6, %5 : vector<8x256xf32>
    %8 = math.exp %7 : vector<8x256xf32>
    %cst_4 = arith.constant 0.000000e+00 : f32
    %9 = vector.broadcast %cst_4 : f32 to vector<8x256xf32>
    %10 = arith.maximumf %3, %9 : vector<8x256xf32>
    %11 = arith.mulf %3, %4 : vector<8x256xf32>
    %12 = arith.subf %10, %11 : vector<8x256xf32>
    %13 = math.log1p %8 : vector<8x256xf32>
    %14 = arith.addf %12, %13 : vector<8x256xf32>
    %cst_5 = arith.constant 1.000000e+00 : f32
    %15 = vector.broadcast %cst_5 : f32 to vector<8x256xf32>
    %16 = arith.addf %15, %8 : vector<8x256xf32>
    %cst_6 = arith.constant 1.000000e+00 : f32
    %17 = vector.broadcast %cst_6 : f32 to vector<8x256xf32>
    %18 = arith.divf %17, %16 : vector<8x256xf32>
    %cst_7 = arith.constant 0.000000e+00 : f32
    %19 = vector.broadcast %cst_7 : f32 to vector<8x256xf32>
    %20 = arith.cmpf oge, %3, %19 : vector<8x256xf32>
    %21 = arith.mulf %8, %18 : vector<8x256xf32>
    %22 = arith.select %20, %18, %21 : vector<8x256xi1>, vector<8x256xf32>
    %23 = arith.negf %22 : vector<8x256xf32>
    %24 = math.exp %23 : vector<8x256xf32>
    %cst_8 = arith.constant 1.000000e+00 : f32
    %25 = vector.broadcast %cst_8 : f32 to vector<8x256xf32>
    %26 = arith.addf %25, %24 : vector<8x256xf32>
    %27 = arith.divf %25, %26 : vector<8x256xf32>
    %28 = arith.mulf %27, %4 : vector<8x256xf32>
    %c0_9 = arith.constant 0 : index
    %c0_10 = arith.constant 0 : index
    %c0_11 = arith.constant 0 : index
    %29 = vector.load %arg5[%c0_9, %c0_10, %c0_11] : memref<1x8x1xf32, #tpu.memory_space<vmem>>, vector<1x8x1xf32>
    %30 = vector.shape_cast %29 : vector<1x8x1xf32> to vector<8x1xf32>
    %cst_12 = arith.constant dense<0.000000e+00> : vector<8xf32>
    %31 = vector.multi_reduction <add>, %14, %cst_12 [1] : vector<8x256xf32> to vector<8xf32>
    %32 = vector.shape_cast %31 : vector<8xf32> to vector<8x1xf32>
    %33 = arith.addf %30, %32 : vector<8x1xf32>
    %c0_13 = arith.constant 0 : index
    %c0_14 = arith.constant 0 : index
    %c0_15 = arith.constant 0 : index
    %34 = vector.load %arg5[%c0_13, %c0_14, %c0_15] : memref<1x8x1xf32, #tpu.memory_space<vmem>>, vector<1x8x1xf32>
    %35 = vector.shape_cast %34 : vector<1x8x1xf32> to vector<8x1xf32>
    %36 = vector.shape_cast %33 : vector<8x1xf32> to vector<1x8x1xf32>
    tpu.vector_store %arg5[%c0_13, %c0_14, %c0_15], %36 {strides = array<i32>} : memref<1x8x1xf32, #tpu.memory_space<vmem>>, vector<1x8x1xf32>,
    %c0_16 = arith.constant 0 : index
    %c0_17 = arith.constant 0 : index
    %c0_18 = arith.constant 0 : index
    %37 = vector.load %arg6[%c0_16, %c0_17, %c0_18] : memref<1x8x1xf32, #tpu.memory_space<vmem>>, vector<1x8x1xf32>
    %38 = vector.shape_cast %37 : vector<1x8x1xf32> to vector<8x1xf32>
    %cst_19 = arith.constant dense<0.000000e+00> : vector<8xf32>
    %39 = vector.multi_reduction <add>, %28, %cst_19 [1] : vector<8x256xf32> to vector<8xf32>
    %40 = vector.shape_cast %39 : vector<8xf32> to vector<8x1xf32>
    %41 = arith.addf %38, %40 : vector<8x1xf32>
    %c0_20 = arith.constant 0 : index
    %c0_21 = arith.constant 0 : index
    %c0_22 = arith.constant 0 : index
    %42 = vector.load %arg6[%c0_20, %c0_21, %c0_22] : memref<1x8x1xf32, #tpu.memory_space<vmem>>, vector<1x8x1xf32>
    %43 = vector.shape_cast %42 : vector<1x8x1xf32> to vector<8x1xf32>
    %44 = vector.shape_cast %41 : vector<8x1xf32> to vector<1x8x1xf32>
    tpu.vector_store %arg6[%c0_20, %c0_21, %c0_22], %44 {strides = array<i32>} : memref<1x8x1xf32, #tpu.memory_space<vmem>>, vector<1x8x1xf32>,
    %c0_23 = arith.constant 0 : index
    %c0_24 = arith.constant 0 : index
    %c0_25 = arith.constant 0 : index
    %45 = vector.load %arg7[%c0_23, %c0_24, %c0_25] : memref<1x8x1xf32, #tpu.memory_space<vmem>>, vector<1x8x1xf32>
    %46 = vector.shape_cast %45 : vector<1x8x1xf32> to vector<8x1xf32>
    %cst_26 = arith.constant dense<0.000000e+00> : vector<8xf32>
    %47 = vector.multi_reduction <add>, %27, %cst_26 [1] : vector<8x256xf32> to vector<8xf32>
    %48 = vector.shape_cast %47 : vector<8xf32> to vector<8x1xf32>
    %49 = arith.addf %46, %48 : vector<8x1xf32>
    %c0_27 = arith.constant 0 : index
    %c0_28 = arith.constant 0 : index
    %c0_29 = arith.constant 0 : index
    %50 = vector.load %arg7[%c0_27, %c0_28, %c0_29] : memref<1x8x1xf32, #tpu.memory_space<vmem>>, vector<1x8x1xf32>
    %51 = vector.shape_cast %50 : vector<1x8x1xf32> to vector<8x1xf32>
    %52 = vector.shape_cast %49 : vector<8x1xf32> to vector<1x8x1xf32>
    tpu.vector_store %arg7[%c0_27, %c0_28, %c0_29], %52 {strides = array<i32>} : memref<1x8x1xf32, #tpu.memory_space<vmem>>, vector<1x8x1xf32>,
    %c0_30 = arith.constant 0 : index
    %c0_31 = arith.constant 0 : index
    %c0_32 = arith.constant 0 : index
    %53 = vector.load %arg8[%c0_30, %c0_31, %c0_32] : memref<1x8x1xf32, #tpu.memory_space<vmem>>, vector<1x8x1xf32>
    %54 = vector.shape_cast %53 : vector<1x8x1xf32> to vector<8x1xf32>
    %cst_33 = arith.constant dense<0.000000e+00> : vector<8xf32>
    %55 = vector.multi_reduction <add>, %4, %cst_33 [1] : vector<8x256xf32> to vector<8xf32>
    %56 = vector.shape_cast %55 : vector<8xf32> to vector<8x1xf32>
    %57 = arith.addf %54, %56 : vector<8x1xf32>
    %c0_34 = arith.constant 0 : index
    %c0_35 = arith.constant 0 : index
    %c0_36 = arith.constant 0 : index
    %58 = vector.load %arg8[%c0_34, %c0_35, %c0_36] : memref<1x8x1xf32, #tpu.memory_space<vmem>>, vector<1x8x1xf32>
    %59 = vector.shape_cast %58 : vector<1x8x1xf32> to vector<8x1xf32>
    %60 = vector.shape_cast %57 : vector<8x1xf32> to vector<1x8x1xf32>
    tpu.vector_store %arg8[%c0_34, %c0_35, %c0_36], %60 {strides = array<i32>} : memref<1x8x1xf32, #tpu.memory_space<vmem>>, vector<1x8x1xf32>,
    return
  }
  func.func @transform_0(%arg0: i32, %arg1: i32, %arg2: i32) -> (i32, i32) {
    %c1_i32 = arith.constant 1 : i32
    %0 = arith.muli %arg1, %c1_i32 : i32
    %1 = arith.addi %0, %arg2 : i32
    %c0_i32 = arith.constant 0 : i32
    return %arg0, %1 : i32, i32
  }
  func.func @transform_1(%arg0: i32, %arg1: i32, %arg2: i32) -> (i32, i32) {
    %c1_i32 = arith.constant 1 : i32
    %0 = arith.muli %arg1, %c1_i32 : i32
    %1 = arith.addi %0, %arg2 : i32
    %c0_i32 = arith.constant 0 : i32
    return %arg0, %1 : i32, i32
  }
  func.func @transform_2(%arg0: i32, %arg1: i32, %arg2: i32) -> (i32, i32, i32) {
    %c0_i32 = arith.constant 0 : i32
    %c0_i32_0 = arith.constant 0 : i32
    return %arg1, %arg0, %c0_i32 : i32, i32, i32
  }
  func.func @transform_3(%arg0: i32, %arg1: i32, %arg2: i32) -> (i32, i32, i32) {
    %c0_i32 = arith.constant 0 : i32
    %c0_i32_0 = arith.constant 0 : i32
    return %arg1, %arg0, %c0_i32 : i32, i32, i32
  }
  func.func @transform_4(%arg0: i32, %arg1: i32, %arg2: i32) -> (i32, i32, i32) {
    %c0_i32 = arith.constant 0 : i32
    %c0_i32_0 = arith.constant 0 : i32
    return %arg1, %arg0, %c0_i32 : i32, i32, i32
  }
  func.func @transform_5(%arg0: i32, %arg1: i32, %arg2: i32) -> (i32, i32, i32) {
    %c0_i32 = arith.constant 0 : i32
    %c0_i32_0 = arith.constant 0 : i32
    return %arg1, %arg0, %c0_i32 : i32, i32, i32
  }
}

</mosaic_0001>

<bundles_post_ra>
// kernel: tpu_custom_call.1
= control target key start
LH: loop header
LB: loop body
LE: loop exit
PB: predicated region body
PF: predicated region fallthrough
CT: control target
= control target key end

     0   :  { %11 = vsyncpa [#allocation3], 0  ;;  %s341_s0 = inlined_call_operand.hbm [shape: f32[8,256], index: 0, kind: input, shape index: {}]   ;;  %s342_s1 = inlined_call_operand.hbm [shape: f32[8,256], index: 1, kind: input, shape index: {}]   ;;  %s343_s2 = inlined_call_operand.vmem [shape: f32[1,8,1], index: 2, kind: output, shape index: {0}]   ;;  %s344_s3 = inlined_call_operand.vmem [shape: f32[1,8,1], index: 3, kind: output, shape index: {1}]   ;;  %s345_s4 = inlined_call_operand.vmem [shape: f32[1,8,1], index: 4, kind: output, shape index: {2}]   ;;  %s346_s5 = inlined_call_operand.vmem [shape: f32[1,8,1], index: 5, kind: output, shape index: {3}]  }
   0x1   :  { %12 = vsyncpa [#allocation5], 0  ;;  %s240_s18 = smov [#allocation2]   ;;  %s241_s20 = smov [#allocation4]  }
   0x2   :  { %s23_s19 = sshll.u32 %s240_s18, 4  ;;  %s37_s21 = sshll.u32 %s241_s20, 4  ;;  %s24_s19 = int_to_ptr.vmem [resolvable:$true] %s23_s19  ;;  %s38_s21 = int_to_ptr.vmem [resolvable:$true] %s37_s21 }
   0x3   :  { %s192_s24 = scalar_lea.hbm %s341_s0, 256 }
   0x4   :  { %p193_p0 = scmp.ne.s32.totalorder %s341_s0, %s192_s24  ;;  %p196_p1 = scmp.lt.u32.totalorder %s192_s24, %s341_s0 }
   0x6   :  { %p198_p2 = pnand %p196_p1, %p193_p0 }
   0x8   :  { %201 = shalt.err (!%p198_p2)
}
   0x9   :  { %s202_s29 = scalar_lea.vmem %s24_s19, 256  ;;  %p207_p4 = scmp.lt.s32.totalorder %s24_s19, %s24_s19 }
   0xa   :  { %p203_p3 = scmp.ne.s32.totalorder %s24_s19, %s202_s29  ;;  %p208_p5 = scmp.lt.s32.totalorder %s202_s29, %s202_s29 }
   0xc   :  { %p209_p6 = por %p208_p5, %p207_p4 }
   0xe   :  { %p210_p7 = pnand %p209_p6, %p203_p3 }
  0x10   :  { %213 = shalt.err (!%p210_p7)
}
  0x11   :  { %26 = dma.hbm_to_vmem [thread:$0]  %s341_s0, 256, %s24_s19, [#allocation3]  }
  0x12   :  { %s214_s9 = scalar_lea.hbm %s342_s1, 256 }
  0x13   :  { %p215_p8 = scmp.ne.s32.totalorder %s342_s1, %s214_s9  ;;  %p218_p9 = scmp.lt.u32.totalorder %s214_s9, %s342_s1 }
  0x15   :  { %p220_p10 = pnand %p218_p9, %p215_p8 }
  0x17   :  { %223 = shalt.err (!%p220_p10)
}
  0x18   :  { %s224_s14 = scalar_lea.vmem %s38_s21, 256  ;;  %p229_p12 = scmp.lt.s32.totalorder %s38_s21, %s38_s21 }
  0x19   :  { %p225_p11 = scmp.ne.s32.totalorder %s38_s21, %s224_s14  ;;  %p230_p13 = scmp.lt.s32.totalorder %s224_s14, %s224_s14 }
  0x1b   :  { %p231_p0 = por %p230_p13, %p229_p12 }
  0x1d   :  { %p232_p1 = pnand %p231_p0, %p225_p11 }
  0x1f   :  { %235 = shalt.err (!%p232_p1)
}
  0x20   :  { %40 = dma.hbm_to_vmem [thread:$0]  %s342_s1, 256, %s38_s21, [#allocation5]  }
  0x21   :  { %236 = dma.done.wait [#allocation3], 256  }
  0x22   :  { %237 = vsyncadd [#allocation3], 4294967040 }
  0x23   :  { %238 = dma.done.wait [#allocation5], 256  }
  0x24   :  { %239 = vsyncadd [#allocation5], 4294967040  ;;  %vm55_vm0 = vcmask 7168   ;;  %v242_v0 = vmov 0.0   ;;  %v60_v1 = vld [vmem:[#allocation2] sm:$0xff]  ;;  %v61_v2 = vld [vmem:[#allocation2 + $0x8] sm:$0xff] }
  0x25   :  { %58 = vst.msk [vmem:[%s345_s4] sm:$0xff] %vm55_vm0, %v242_v0  ;;  %56 = vst.msk [vmem:[%s343_s2] sm:$0xff] %vm55_vm0, %v242_v0  ;;  %v64_v3 = vand.u32 2147483647, %v60_v1  ;;  %v65_v4 = vand.u32 2147483647, %v61_v2 }
  0x26   :  { %57 = vst.msk [vmem:[%s344_s3] sm:$0xff] %vm55_vm0, %v242_v0  ;;  %59 = vst.msk [vmem:[%s346_s5] sm:$0xff] %vm55_vm0, %v242_v0  ;;  %v62_v15 = vld [vmem:[#allocation4] sm:$0xff]  ;;  %v63_v16 = vld [vmem:[#allocation4 + $0x8] sm:$0xff]  ;;  %v72_v18 = vmax.f32 %v60_v1, 0.0  ;;  %v73_v22 = vmax.f32 %v61_v2, 0.0 }
  0x27   :  { %v66_v5 = vsub.f32 0.0, %v64_v3  ;;  %v67_v6 = vsub.f32 0.0, %v65_v4  ;;  %v74_v19 = vmul.f32 %v62_v15, %v60_v1  ;;  %v75_v23 = vmul.f32 %v63_v16, %v61_v2 }
  0x28   :  { %vm104_vm1 = vcmp.ge.f32.partialorder %v60_v1, 0.0  ;;  %vm105_vm2 = vcmp.ge.f32.partialorder %v61_v2, 0.0  ;;  %v144_v55 = vadd.f32 %v63_v16, %v62_v15 }
  0x29   :  { %v68_v7 = vmul.f32 1.442695, %v66_v5  ;;  %v70_v8 = vmul.f32 1.442695, %v67_v6  ;;  %v76_v31 = vsub.f32 %v72_v18, %v74_v19  ;;  %v77_v35 = vsub.f32 %v73_v22, %v75_v23 }
  0x2b   :  { %172 = vpow2.f32 %v68_v7 }
  0x2c   :  { %174 = vpow2.f32 %v70_v8  ;;  %v124_v57 = vld [vmem:[%s343_s2] sm:$0xff] }
  0x2d   :  { %v137_v60 = vld [vmem:[%s345_s4] sm:$0xff] }
  0x2e   :  { %v131_v62 = vld [vmem:[%s344_s3] sm:$0xff] }
  0x2f   :  { %v143_v0 = vld [vmem:[%s346_s5] sm:$0xff] }
  0x35   :  { %v173_v9 = vpop.eup %172 }
  0x36   :  { %v175_v10 = vpop.eup %174  ;;  %v78_v11 = vadd.f32 1.0, %v173_v9  ;;  %v81_v13 = vmul.f32 -0.5, %v173_v9  ;;  %v84_v20 = vand.u32 2147483647, %v173_v9 }
  0x37   :  { %v87_v12 = vadd.f32 1.0, %v175_v10  ;;  %v90_v14 = vmul.f32 -0.5, %v175_v10  ;;  %v93_v24 = vand.u32 2147483647, %v175_v10 }
  0x38   :  { %176 = vrcp.f32 %v78_v11  ;;  %v82_v17 = vadd.f32 1.0, %v81_v13  ;;  %vm85_vm3 = vcmp.lt.f32.partialorder %v84_v20, 0.0004427343 }
  0x39   :  { %178 = vrcp.f32 %v87_v12  ;;  %v91_v21 = vadd.f32 1.0, %v90_v14  ;;  %vm94_vm4 = vcmp.lt.f32.partialorder %v93_v24, 0.0004427343 }
  0x3a   :  { %180 = vlog2.f32 %v78_v11  ;;  %v83_v28 = vmul.f32 %v173_v9, %v82_v17 }
  0x3b   :  { %182 = vlog2.f32 %v87_v12  ;;  %v92_v32 = vmul.f32 %v175_v10, %v91_v21 }
  0x42   :  { %v177_v25 = vpop.eup %176 }
  0x43   :  { %v179_v26 = vpop.eup %178  ;;  %v106_v27 = vmul.f32 %v177_v25, %v173_v9 }
  0x44   :  { %v181_v29 = vpop.eup %180  ;;  %v107_v30 = vmul.f32 %v179_v26, %v175_v10 }
  0x45   :  { %v183_v33 = vpop.eup %182  ;;  %v108_v34 = vsel %vm104_vm1, %v177_v25, %v106_v27  ;;  %v80_v36 = vmul.f32 0.6931472, %v181_v29 }
  0x46   :  { %v109_v37 = vsel %vm105_vm2, %v179_v26, %v107_v30  ;;  %v167_v38 = vmul.f32 -1.442695, %v108_v34  ;;  %v89_v39 = vmul.f32 0.6931472, %v183_v33 }
  0x47   :  { %v168_v40 = vmul.f32 -1.442695, %v109_v37  ;;  %v86_v41 = vsel %vm85_vm3, %v83_v28, %v80_v36 }
  0x48   :  { %184 = vpow2.f32 %v167_v38  ;;  %v95_v42 = vsel %vm94_vm4, %v92_v32, %v89_v39  ;;  %v96_v43 = vadd.f32 %v86_v41, %v76_v31 }
  0x49   :  { %186 = vpow2.f32 %v168_v40  ;;  %v97_v44 = vadd.f32 %v95_v42, %v77_v35 }
  0x4b   :  { %v125_v45 = vadd.f32 %v97_v44, %v96_v43 }
  0x4d   :  { %126 = vadd.xlane.f32.xlu0 %v125_v45 }
  0x52   :  { %v185_v46 = vpop.eup %184 }
  0x53   :  { %v187_v47 = vpop.eup %186  ;;  %v116_v48 = vadd.f32 1.0, %v185_v46 }
  0x54   :  { %v117_v49 = vadd.f32 1.0, %v187_v47 }
  0x55   :  { %188 = vrcp.f32 %v116_v48 }
  0x56   :  { %190 = vrcp.f32 %v117_v49 }
  0x5f   :  { %v189_v50 = vpop.eup %188 }
  0x60   :  { %v191_v51 = vpop.eup %190  ;;  %v122_v52 = vmul.f32 %v189_v50, %v62_v15 }
  0x61   :  { %v138_v53 = vadd.f32 %v191_v51, %v189_v50  ;;  %v123_v54 = vmul.f32 %v191_v51, %v63_v16 }
  0x63   :  { %139 = vadd.xlane.f32.xlu1 %v138_v53  ;;  %v132_v56 = vadd.f32 %v123_v54, %v122_v52 }
  0x65   :  { %133 = vadd.xlane.f32.xlu0 %v132_v56 }
  0x67   :  { %145 = vadd.xlane.f32.xlu1 %v144_v55 }
  0xda   :  { %v127_v58 = vpop.xlane.xlu0 %126 }
  0xdb   :  { %v128_v59 = vadd.f32 %v127_v58, %v124_v57 }
  0xdd   :  { %130 = vst.msk [vmem:[%s343_s2] sm:$0xff] %vm55_vm0, %v128_v59 }
  0xf0   :  { %v140_v61 = vpop.xlane.xlu1 %139 }
  0xf1   :  { %v141_v63 = vadd.f32 %v140_v61, %v137_v60 }
  0xf2   :  { %v134_v1 = vpop.xlane.xlu0 %133 }
  0xf3   :  { %142 = vst.msk [vmem:[%s345_s4] sm:$0xff] %vm55_vm0, %v141_v63  ;;  %v135_v2 = vadd.f32 %v134_v1, %v131_v62 }
  0xf4   :  { %v146_v3 = vpop.xlane.xlu1 %145 }
  0xf5   :  { %v147_v4 = vadd.f32 %v146_v3, %v143_v0  ;;  %136 = vst.msk [vmem:[%s344_s3] sm:$0xff] %vm55_vm0, %v135_v2 }
  0xf7   :  { %148 = vst.msk [vmem:[%s346_s5] sm:$0xff] %vm55_vm0, %v147_v4 }
  0xf8   :  { %165 = vsyncpa [#allocation3], 1 }
  0xf9   :  { %166 = vsyncpa [#allocation5], 1 }

</bundles_post_ra>
